<compile_context>
chip_gen: v7x
topology: tpu7x:2x2x1
jax: 0.10.0
libtpu: 0.0.40
codegen_flags: <defaults>
</compile_context>

<pallas_src>
import functools

import jax
import jax.numpy as jnp
from jax.experimental import pallas as pl
from jax.experimental.pallas import tpu as pltpu


def _round_up(n: int, m: int) -> int:
    return ((n + m - 1) // m) * m


def _cdiv(a: int, b: int) -> int:
    return (a + b - 1) // b


def _sublane(dtype) -> int:
    # Minimum sublane tile: 8 rows for 4-byte, 16 for 2-byte, 32 for 1-byte dtypes.
    return max(8, 32 // jnp.dtype(dtype).itemsize)


def _vmem_budget_bytes() -> int:
    """Scoped-VMEM budget for this kernel, derived from the chip generation."""
    cap = None
    try:
        cap = getattr(pltpu.get_tpu_info(), "vmem_capacity_bytes", None)
    except Exception:
        cap = None
    if not cap:
        cap = 128 * 2**20  # conservative default (v5e/v6e-class)
    if cap <= 64 * 2**20:
        # v7x-class (64 MiB physical): stay well under physical VMEM.
        return int(min(cap - 12 * 2**20, 52 * 2**20))
    # 128 MiB parts (v5e / v6e): generous but below physical.
    return int(min(int(cap * 0.78), 100 * 2**20))


def _weight_spec(block_shape):
    """Constant-index weight BlockSpec, single-buffered when supported."""
    index_map = lambda i: (0, 0)
    try:
        if hasattr(pl, "Buffered"):
            return pl.BlockSpec(block_shape, index_map, pipeline_mode=pl.Buffered(1))
    except TypeError:
        pass
    return pl.BlockSpec(block_shape, index_map)


def _diffuser_kernel(x_ref, w_diff_ref, w_rec_ref, o_ref, *, mxu_dtype):
    # x_ref:      [tm, input_size_p]       (x's HBM dtype; cast to MXU dtype in VMEM)
    # w_diff_ref: [input_size_p, masks_p]  (mxu_dtype, VMEM-resident)
    # w_rec_ref:  [masks_p, input_size_p]  (mxu_dtype, VMEM-resident)
    # o_ref:      [tm, input_size_p]       (output dtype)
    x = x_ref[...].astype(mxu_dtype)
    compressed = jnp.dot(x, w_diff_ref[...], preferred_element_type=jnp.float32)
    # Feed the 2nd matmul in the MXU-native dtype; keep f32 accumulation.
    compressed = compressed.astype(mxu_dtype)
    reconstructed = jnp.dot(compressed, w_rec_ref[...],
                            preferred_element_type=jnp.float32)
    o_ref[...] = reconstructed.astype(o_ref.dtype)


def diffuser_layer(x, diffuser_weights, reconstruction_weights, *, tm=1024,
                   compute_dtype=None, out_dtype=None):
    """Fused (x @ W_diff) @ W_rec on TPU via Pallas.

    x: [..., input_size]
    diffuser_weights: [input_size, num_of_masks]
    reconstruction_weights: [num_of_masks, input_size]
    tm: requested row-tile (rows of x per grid step); auto-clamped to the
        per-generation VMEM budget and to >= 4 grid steps for megacore.
    compute_dtype: optional MXU dtype (e.g. jnp.bfloat16). x stays in its HBM
        dtype and is cast inside the kernel; accumulation is always f32.
        (Recommended on v5e, where f32 matmul is emulated.)
    out_dtype: optional output dtype (defaults to x.dtype).
    """
    input_size, num_of_masks = diffuser_weights.shape
    assert x.shape[-1] == input_size
    assert reconstruction_weights.shape == (num_of_masks, input_size)

    out_dt = jnp.dtype(out_dtype) if out_dtype is not None else jnp.dtype(x.dtype)
    mxu_dt = jnp.dtype(compute_dtype) if compute_dtype is not None else jnp.dtype(x.dtype)

    orig_shape = x.shape
    x2 = x.reshape(-1, input_size)
    batch = x2.shape[0]

    # Weights are tiny: cast them wrapper-side (negligible); x is cast in-kernel.
    w_diff = diffuser_weights.astype(mxu_dt)
    w_rec = reconstruction_weights.astype(mxu_dt)

    # Zero-pad the small mask dim to a full 128-lane width (exact: zeros add nothing).
    masks_p = _round_up(num_of_masks, 128)
    if masks_p != num_of_masks:
        w_diff = jnp.pad(w_diff, ((0, 0), (0, masks_p - num_of_masks)))
        w_rec = jnp.pad(w_rec, ((0, masks_p - num_of_masks), (0, 0)))

    # Lane-pad input_size only if needed so the output slab is lane-dense (128-multiple).
    input_size_p = _round_up(input_size, 128)
    if input_size_p != input_size:
        x2 = jnp.pad(x2, ((0, 0), (0, input_size_p - input_size)))
        w_diff = jnp.pad(w_diff, ((0, input_size_p - input_size), (0, 0)))
        w_rec = jnp.pad(w_rec, ((0, 0), (0, input_size_p - input_size)))

    x_bytes = jnp.dtype(x2.dtype).itemsize
    o_bytes = out_dt.itemsize
    w_bytes = mxu_dt.itemsize
    sub = max(_sublane(x2.dtype), _sublane(out_dt))

    # ---- Tile size from the per-generation VMEM budget (weights single-buffered) ----
    budget = _vmem_budget_bytes()
    weight_bytes = 2 * input_size_p * masks_p * w_bytes                    # one copy each
    per_row = 2 * input_size_p * (x_bytes + o_bytes) + masks_p * 4         # dbl-buf io + f32 interm.
    headroom = 4 << 20
    avail = max(budget - weight_bytes - headroom, per_row * sub)
    tm_vmem = max(sub, (avail // per_row) // sub * sub)

    # ---- >= 4 grid steps so the "parallel" axis spans both v7x TensorCores ----
    rows = _round_up(max(batch, 1), sub)
    tm_split = max(sub, _round_up(_cdiv(rows, 4), sub))

    tm_eff = max(sub, min(_round_up(int(tm), sub), tm_vmem, tm_split, rows))

    # No batch padding: Pallas masks the ragged edge block; rows are independent.
    grid = (_cdiv(batch, tm_eff),)

    usage = weight_bytes + tm_eff * per_row
    vmem_limit = int(min(budget, usage + (4 << 20)))
    vmem_limit = int(max(vmem_limit, usage + (1 << 20), 16 << 20))

    flops = 4 * batch * input_size_p * masks_p
    bytes_accessed = (batch * input_size_p * (x_bytes + o_bytes)
                      + 2 * input_size_p * masks_p * w_bytes)
    cost = pl.CostEstimate(flops=flops, transcendentals=0,
                           bytes_accessed=bytes_accessed)

    kernel = functools.partial(_diffuser_kernel, mxu_dtype=mxu_dt)

    out = pl.pallas_call(
        kernel,
        out_shape=jax.ShapeDtypeStruct((batch, input_size_p), out_dt),
        grid_spec=pltpu.PrefetchScalarGridSpec(
            num_scalar_prefetch=0,
            grid=grid,
            in_specs=[
                # Row tile of x marches down the batch axis.
                pl.BlockSpec((tm_eff, input_size_p), lambda i: (i, 0)),
                # Weights: full arrays, constant index -> VMEM-resident, single-buffered.
                _weight_spec((input_size_p, masks_p)),
                _weight_spec((masks_p, input_size_p)),
            ],
            out_specs=pl.BlockSpec((tm_eff, input_size_p), lambda i: (i, 0)),
        ),
        compiler_params=pltpu.CompilerParams(
            dimension_semantics=("parallel",),   # megacore sharding on v7x
            vmem_limit_bytes=vmem_limit,
        ),
        cost_estimate=cost,
    )(x2, w_diff, w_rec)

    if input_size_p != input_size:
        out = out[:, :input_size]
    return out.reshape(orig_shape[:-1] + (input_size,))


if __name__ == "__main__":
    # Small, deterministic shapes consistent with the module.
    batch = 16
    input_size = 128
    num_of_masks = 64

    key = jax.random.PRNGKey(0)
    k_x, k_w1, k_w2 = jax.random.split(key, 3)

    # Deterministic parameter init mirroring torch.randn(...) * 0.01.
    x = jax.random.normal(k_x, (batch, input_size), dtype=jnp.float32)
    diffuser_weights = (
        jax.random.normal(k_w1, (input_size, num_of_masks), dtype=jnp.float32) * 0.01
    )
    reconstruction_weights = (
        jax.random.normal(k_w2, (num_of_masks, input_size), dtype=jnp.float32) * 0.01
    )

    # Pure-JAX reference.
    ref = (x @ diffuser_weights) @ reconstruction_weights

    # Default f32 path: matches the PyTorch forward numerics exactly.
    out = jax.block_until_ready(
        diffuser_layer(x, diffuser_weights, reconstruction_weights)
    )
    assert out.shape == (batch, input_size)
    assert out.dtype == jnp.float32
    assert jnp.allclose(out, ref, atol=1e-5, rtol=1e-5), "f32 mismatch vs reference"

    # Ragged batch (not a multiple of the row tile / sublane): handled by the
    # masked edge block, with no wrapper-side padding pass.
    out_r = jax.block_until_ready(
        diffuser_layer(x[:13], diffuser_weights, reconstruction_weights, tm=256)
    )
    assert out_r.shape == (13, input_size)
    assert jnp.allclose(out_r, ref[:13], atol=1e-5, rtol=1e-5), "ragged mismatch"

    # bf16 MXU path (recommended on v5e): x stays f32 in HBM, cast in-kernel;
    # f32 accumulation kept, so only a small relative error vs. the f32 reference.
    out_bf16 = jax.block_until_ready(
        diffuser_layer(x, diffuser_weights, reconstruction_weights,
                       compute_dtype=jnp.bfloat16)
    )
    assert out_bf16.dtype == jnp.float32
    assert jnp.allclose(out_bf16, ref, atol=2e-3, rtol=1e-1), "bf16 mismatch"

    print("KERNEL_OK")
</pallas_src>

<mosaic_0001>
module attributes {stable_mosaic.version = 11 : i64} {
  func.func @_diffuser_kernel(%arg0: i32, %arg1: memref<8x128xf32, #tpu.memory_space<vmem>>, %arg2: memref<128x128xf32, #tpu.memory_space<vmem>>, %arg3: memref<128x128xf32, #tpu.memory_space<vmem>>, %arg4: memref<8x128xf32, #tpu.memory_space<vmem>>) attributes {dimension_semantics = [#tpu.dimension_semantics<parallel>], iteration_bounds = array<i64: 2>, scalar_prefetch = 0 : i64, scratch_operands = 0 : i64, tpu.core_type = #tpu.core_type<tc>, window_params = [{transform_indices = @transform_0, window_bounds = array<i64: 8, 128>}, {pipeline_mode = #tpu.pipeline_mode<synchronous>, transform_indices = @transform_1, window_bounds = array<i64: 128, 128>}, {pipeline_mode = #tpu.pipeline_mode<synchronous>, transform_indices = @transform_2, window_bounds = array<i64: 128, 128>}, {transform_indices = @transform_3, window_bounds = array<i64: 8, 128>}]} {
    %c0 = arith.constant 0 : index
    %c0_0 = arith.constant 0 : index
    %0 = vector.load %arg1[%c0, %c0_0] : memref<8x128xf32, #tpu.memory_space<vmem>>, vector<8x128xf32>
    %c0_1 = arith.constant 0 : index
    %c0_2 = arith.constant 0 : index
    %1 = vector.load %arg2[%c0_1, %c0_2] : memref<128x128xf32, #tpu.memory_space<vmem>>, vector<128x128xf32>
    %cst = arith.constant dense<0.000000e+00> : vector<8x128xf32>
    %2 = tpu.matmul %0, %1, %cst {dimension_numbers = #tpu.dot_dimension_numbers<[1], [0], [0], [1], [0, 0, 1, 1], [], []>} : vector<8x128xf32>, vector<128x128xf32>, vector<8x128xf32> -> vector<8x128xf32>
    %c0_3 = arith.constant 0 : index
    %c0_4 = arith.constant 0 : index
    %3 = vector.load %arg3[%c0_3, %c0_4] : memref<128x128xf32, #tpu.memory_space<vmem>>, vector<128x128xf32>
    %cst_5 = arith.constant dense<0.000000e+00> : vector<8x128xf32>
    %4 = tpu.matmul %2, %3, %cst_5 {dimension_numbers = #tpu.dot_dimension_numbers<[1], [0], [0], [1], [0, 0, 1, 1], [], []>} : vector<8x128xf32>, vector<128x128xf32>, vector<8x128xf32> -> vector<8x128xf32>
    %c0_6 = arith.constant 0 : index
    %c0_7 = arith.constant 0 : index
    %5 = vector.load %arg4[%c0_6, %c0_7] : memref<8x128xf32, #tpu.memory_space<vmem>>, vector<8x128xf32>
    tpu.vector_store %arg4[%c0_6, %c0_7], %4 {strides = array<i32>} : memref<8x128xf32, #tpu.memory_space<vmem>>, vector<8x128xf32>,
    return
  }
  func.func @transform_0(%arg0: i32) -> (i32, i32) {
    %c0_i32 = arith.constant 0 : i32
    %c0_i32_0 = arith.constant 0 : i32
    return %arg0, %c0_i32 : i32, i32
  }
  func.func @transform_1(%arg0: i32) -> (i32, i32) {
    %c0_i32 = arith.constant 0 : i32
    %c0_i32_0 = arith.constant 0 : i32
    %c0_i32_1 = arith.constant 0 : i32
    return %c0_i32, %c0_i32_0 : i32, i32
  }
  func.func @transform_2(%arg0: i32) -> (i32, i32) {
    %c0_i32 = arith.constant 0 : i32
    %c0_i32_0 = arith.constant 0 : i32
    %c0_i32_1 = arith.constant 0 : i32
    return %c0_i32, %c0_i32_0 : i32, i32
  }
  func.func @transform_3(%arg0: i32) -> (i32, i32) {
    %c0_i32 = arith.constant 0 : i32
    %c0_i32_0 = arith.constant 0 : i32
    return %arg0, %c0_i32 : i32, i32
  }
}

</mosaic_0001>

<bundles_post_ra>
// kernel: tpu_custom_call.1
= control target key start
LH: loop header
LB: loop body
LE: loop exit
PB: predicated region body
PF: predicated region fallthrough
CT: control target
= control target key end

     0   :  { %8 = vsyncpa [#allocation3], 0  ;;  %s1171_s0 = inlined_call_operand.hbm [shape: f32[16,128], index: 0, kind: input, shape index: {}]   ;;  %s1172_s1 = inlined_call_operand.hbm [shape: f32[128,128], index: 1, kind: input, shape index: {}]   ;;  %s1173_s2 = inlined_call_operand.hbm [shape: f32[128,128], index: 2, kind: input, shape index: {}]   ;;  %s1174_s3 = inlined_call_operand.hbm [shape: f32[16,128], index: 3, kind: output, shape index: {}]  }
   0x1   :  { %10 = vsyncpa [#allocation3 + $0x1], 0 }
   0x2   :  { %11 = vsyncpa [#allocation6], 0 }
   0x3   :  { %12 = vsyncpa [#allocation4], 0 }
   0x4   :  { %14 = vsyncpa [#allocation4 + $0x1], 0  ;;  %s919_s12 = smov 0   ;;  %s921_s13 = smov 0  }
   0x5   :  { %s923_s14 = smov 0   ;;  %s925_s15 = smov 0  }
   0x6 LB: > { %s940_s16 = sadd.s32 4294967295, %s888_s15   ;;  %s492_s17 = sadd.s32 4294967294, %s888_s15   ;;  %s888_s15 = sphi %s925_s15, %s1194_s15   ;;  %s884_s14 = sphi %s923_s14, %s1193_s14   ;;  %s880_s13 = sphi %s921_s13, %s1192_s13   ;;  %s876_s12 = sphi %s919_s12, %s1191_s12  }
   0x7   : > { %p40_p0 = scmp.ne.s32.totalorder %s880_s13, %s876_s12  ;;  %p1175_p1 = scmp.eq.s32.totalorder %s940_s16, 0 }
   0x8   : > { %p112_p3 = scmp.eq.s32.totalorder %s492_s17, 1  ;;  %p493_p5 = scmp.ge.s32.totalorder %s888_s15, 1 }
   0x9   : > { %p949_p4 = por %p1175_p1, %p40_p0  ;;  %p119_p7 = scmp.lt.s32.totalorder %s888_s15, 3 }
   0xa   : > { %p954_p6 = por %p112_p3, %p40_p0  ;;  %s890_s21 = smov [#allocation5]  }
   0xb   : > { %s1178_s18 = scalar_select %p949_p4, 1, 0 }
   0xc   : > { %s1179_s19 = scalar_select %p954_p6, 1, 0 }
   0xd   : > { %p959_p8 = pnand %p493_p5, %p119_p7  ;;  %s131_s22 = sshll.u32 %s890_s21, 4  ;;  %s963_s22 = int_to_ptr.vmem [resolvable:$true] %s131_s22 }
   0xe   : > { %s891_s24 = smov [#allocation7]   ;;  %s732_s28 = scalar_lea.hbm %s1172_s1, 2048 }
   0xf   : > { %p672_p9 = pneg %p959_p8  ;;  %s144_s25 = sshll.u32 %s891_s24, 4  ;;  %s974_s25 = int_to_ptr.vmem [resolvable:$true] %s144_s25 }
  0x10   : > { %p733_p12 = scmp.ne.s32.totalorder %s1172_s1, %s732_s28  ;;  %p739_p5 = scmp.lt.u32.totalorder %s732_s28, %s1172_s1 }
  0x11   : > { %p970_p11 = pnand %p672_p9, %p1175_p1 }
  0x13   : > { %p734_p13 = pneg %p970_p11 }
  0x15   : > { %p735_p0 = pnand %p734_p13, %p733_p12 }
  0x17   : > { %p736_p3 = pneg %p735_p0 }
  0x19   : > { %p741_p7 = pnand %p739_p5, %p736_p3 }
  0x1b   : > { %744 = shalt.err (!%p741_p7)
}
  0x1c   : > { %s745_s6 = scalar_lea.vmem %s963_s22, 2048  ;;  %p753_p2 = scmp.lt.s32.totalorder %s963_s22, %s963_s22 }
  0x1d   : > { %p746_p9 = scmp.ne.s32.totalorder %s963_s22, %s745_s6  ;;  %p754_p12 = scmp.lt.s32.totalorder %s745_s6, %s745_s6 }
  0x1f   : > { %p748_p10 = pnand %p746_p9, %p734_p13  ;;  %p755_p0 = por %p754_p12, %p753_p2 }
  0x21   : > { %p749_p1 = pneg %p748_p10 }
  0x23   : > { %p756_p6 = pnand %p755_p0, %p749_p1 }
  0x25   : > { %759 = shalt.err (!%p756_p6)
}
  0x26   : > { %s892_s7 = smov 128   ;;  %s893_s8 = smov 8  }
  0x27   : > { %675 = dma.hbm_to_vmem [thread:$0]  (!%p970_p11), %s1172_s1, 2048, %s963_s22, [#allocation6], %s892_s7, %s892_s7, %s893_s8  }
  0x28   : > { %s760_s21 = scalar_lea.hbm %s1173_s2, 2048 }
  0x29   : > { %p761_p2 = scmp.ne.s32.totalorder %s1173_s2, %s760_s21  ;;  %p767_p10 = scmp.lt.u32.totalorder %s760_s21, %s1173_s2 }
  0x2b   : > { %p763_p1 = pnand %p761_p2, %p734_p13 }
  0x2d   : > { %p764_p6 = pneg %p763_p1 }
  0x2f   : > { %p769_p3 = pnand %p767_p10, %p764_p6 }
  0x31   : > { %772 = shalt.err (!%p769_p3)
}
  0x32   : > { %s773_s22 = scalar_lea.vmem %s974_s25, 2048  ;;  %p781_p12 = scmp.lt.s32.totalorder %s974_s25, %s974_s25 }
  0x33   : > { %p774_p5 = scmp.ne.s32.totalorder %s974_s25, %s773_s22  ;;  %p782_p0 = scmp.lt.s32.totalorder %s773_s22, %s773_s22 }
  0x35   : > { %p776_p7 = pnand %p774_p5, %p734_p13  ;;  %p783_p2 = por %p782_p0, %p781_p12 }
  0x37   : > { %p777_p9 = pneg %p776_p7 }
  0x39   : > { %p784_p1 = pnand %p783_p2, %p777_p9 }
  0x3b   : > { %787 = shalt.err (!%p784_p1)
}
  0x3c   : > { %678 = dma.hbm_to_vmem [thread:$0]  (!%p970_p11), %s1173_s2, 2048, %s974_s25, [#allocation6], %s892_s7, %s892_s7, %s893_s8  }
  0x3d   : > { %s1029_s4 = sadd.s32 1, %s888_s15   ;;  %s27_s23 = sadd.s32 1, %s884_s14 }
  0x3e   : > { %s24_s5 = ssub.s32 %s888_s15, %s1029_s4  ;;  %p34_p13 = scmp.ne.s32.totalorder %s884_s14, %s880_s13 }
  0x3f   : > { %p25_p6 = scmp.eq.s32.totalorder %s24_s5, 0  ;;  %p35_p10 = scmp.eq.s32.totalorder %s888_s15, 0 }
  0x40   : > { %p1182_p3 = scmp.eq.s32.totalorder %s940_s16, 1  ;;  %p689_p7 = scmp.lt.s32.totalorder %s888_s15, 2 }
  0x41   : > { %s1045_s9 = scalar_select %p25_p6, %s884_s14, %s27_s23  }
  0x42   : > { %p1039_p5 = por %p1182_p3, %p34_p13  ;;  %p36_p9 = por %p35_p10, %p34_p13 }
  0x43   : > { %s158_s10 = sand.u32 1, %s884_s14   ;;  %s498_s25 = sshll.u32 %s888_s15, 7 }
  0x44   : > { %s1183_s6 = scalar_select %p1039_p5, 1, 0 }
  0x45   : > { %s497_s11 = sshll.u32 %s158_s10, 3  ;;  %s1052_s17 = scalar_lea.hbm %s1171_s0, %s498_s25 }
  0x46   : > { %s162_s21 = scalar_lea.vmem [#allocation2], %s497_s11  ;;  %p1056_p11 = pnand %p689_p7, %p36_p9 }
  0x47   : > { %s169_s24 = sshll.u32 %s162_s21, 4  ;;  %s159_s27 = scalar_lea.sflag [#allocation3], %s158_s10  ;;  %s1054_s24 = int_to_ptr.vmem [resolvable:$true] %s169_s24 }
  0x48   : > { %s788_s28 = scalar_lea.hbm %s1052_s17, 128  ;;  %p790_p0 = pneg %p1056_p11 }
  0x49   : > { %p789_p12 = scmp.ne.s32.totalorder %s1052_s17, %s788_s28  ;;  %s793_s30 = scalar_lea.hbm %s1171_s0, 256 }
  0x4a   : > { %p794_p13 = scmp.lt.u32.totalorder %s1052_s17, %s1171_s0  ;;  %p795_p6 = scmp.lt.u32.totalorder %s793_s30, %s788_s28 }
  0x4b   : > { %p791_p2 = pnand %p790_p0, %p789_p12  ;;  %p797_p3 = scmp.lt.u32.totalorder %s788_s28, %s1052_s17 }
  0x4c   : > { %p796_p10 = por %p795_p6, %p794_p13 }
  0x4d   : > { %p792_p1 = pneg %p791_p2 }
  0x4e   : > { %p798_p7 = por %p797_p3, %p796_p10 }
  0x50   : > { %p799_p9 = pnand %p798_p7, %p792_p1 }
  0x52   : > { %802 = shalt.err (!%p799_p9)
}
  0x53   : > { %s803_s10 = scalar_lea.vmem %s1054_s24, 128  ;;  %s894_s11 = smov [#allocation2]  }
  0x54   : > { %p804_p12 = scmp.ne.s32.totalorder %s1054_s24, %s803_s10  ;;  %s808_s25 = sshll.u32 %s894_s11, 4  ;;  %s809_s25 = int_to_ptr.vmem [resolvable:$false] %s808_s25 }
  0x55   : > { %s810_s7 = scalar_lea.vmem %s809_s25, 256  ;;  %p811_p4 = scmp.lt.s32.totalorder %s1054_s24, %s809_s25 }
  0x56   : > { %p806_p2 = pnand %p804_p12, %p790_p0  ;;  %p812_p13 = scmp.lt.s32.totalorder %s810_s7, %s803_s10 }
  0x58   : > { %p807_p5 = pneg %p806_p2  ;;  %p813_p6 = por %p812_p13, %p811_p4 }
  0x5a   : > { %p814_p10 = pnand %p813_p6, %p807_p5 }
  0x5c   : > { %817 = shalt.err (!%p814_p10)
}
  0x5d   : > { %682 = dma.hbm_to_vmem [thread:$0]  (!%p1056_p11), %s1052_s17, 128, %s1054_s24, %s159_s27  }
  0x5e   : > { %178 = sbr.rel (%p959_p8) target bundleno = 577 (0x241), region = 32  ;;  %s1088_s8 = sand.u32 (!%p959_p8), 1, %s880_s13  }
  0x5f   : > { %s500_s21 = sshll.u32 (!%p959_p8), %s1088_s8, 3  ;;  %s181_s28 = scalar_lea.sflag (!%p959_p8), [#allocation3], %s1088_s8 }
  0x60   : > { %s1094_s22 = scalar_lea.vmem (!%p959_p8), [#allocation2], %s500_s21  ;;  %p1185_p4 = scmp.ne.s32.totalorder (!%p959_p8), %s1178_s18, 0 }
  0x65   : > { %863 = dma.done.wait (%p1185_p4), %s181_s28, 128  }
  0x66   : > { %865 = vsyncadd (%p1185_p4), %s181_s28, 4294967168  ;;  %p1186_p5 = scmp.eq.s32.totalorder %s940_s16, 0 }
  0x68   : > { %867 = dma.done.wait (%p1186_p5), [#allocation6], 4096   ;;  %p1187_p8 = pmov %p1186_p5 }
  0x69   : > { %v895_v0 = vmov 0.0|0.0   ;;  %vm896_vm0 = vmmov 0   ;;  %v897_v1 = vmov 0.0   ;;  %v216_v2 = vld [vmem:[#allocation5] sm:$0xff]  ;;  %v217_v3 = vld [vmem:[#allocation5 + $0x8] sm:$0xff]  ;;  %v218_v4 = vld [vmem:[#allocation5 + $0x10] sm:$0xff] }
  0x6a   : > { %869 = vsyncadd (%p1187_p8), [#allocation6], 4294963200  ;;  %612 = vmatprep.subr.bf16.mxu0 %v895_v0  ;;  %574 = vmatprep.mubr.msk.f32.mxu0 %vm896_vm0, %v897_v1  ;;  %v613_v5 = vpack.c.bf16 %v217_v3, %v216_v2  ;;  %v219_v6 = vld [vmem:[#allocation5 + $0x18] sm:$0xff]  ;;  %v220_v8 = vld [vmem:[#allocation5 + $0x20] sm:$0xff]  ;;  %s214_s18 = scalar_lea.vmem [#allocation8], %s500_s21  ;;  %s505_s17 = sshll.u32 %s940_s16, 7 }
  0x6b   : > { %636 = vmatprep.subr.bf16.mxu1 %v895_v0  ;;  %609 = vmatprep.mubr.msk.f32.mxu1 %vm896_vm0, %v897_v1  ;;  %v616_v7 = vpack.c.bf16 %v219_v6, %v218_v4  ;;  %v221_v9 = vld [vmem:[#allocation5 + $0x28] sm:$0xff]  ;;  %v302_v10 = vld [vmem:[#allocation7] sm:$0xff]  ;;  %v304_v12 = vld [vmem:[#allocation7 + $0x10] sm:$0xff]  ;;  %s403_s20 = sshll.u32 %s214_s18, 4  ;;  %s1129_s27 = scalar_lea.hbm %s1174_s3, %s505_s17  ;;  %s1124_s20 = int_to_ptr.vmem [resolvable:$true] %s403_s20 }
  0x6c   : > { %614 = vmatpush3.bf16.msra.mxu0 %v613_v5  ;;  %v303_v11 = vld [vmem:[#allocation7 + $0x8] sm:$0xff]  ;;  %v305_v13 = vld [vmem:[#allocation7 + $0x18] sm:$0xff]  ;;  %v619_v14 = vpack.c.bf16 %v221_v9, %v220_v8  ;;  %v222_v16 = vld [vmem:[#allocation5 + $0x30] sm:$0xff]  ;;  %s390_s29 = scalar_lea.sflag [#allocation4], %s1088_s8  ;;  %s818_s30 = scalar_lea.vmem %s1124_s20, 128 }
  0x6d   : > { %615 = vmatprep.subr.bf16.mxu0 %v895_v0  ;;  %v637_v15 = vpack.c.bf16 %v303_v11, %v302_v10  ;;  %v223_v17 = vld [vmem:[#allocation5 + $0x38] sm:$0xff]  ;;  %v640_v18 = vpack.c.bf16 %v305_v13, %v304_v12  ;;  %v306_v19 = vld [vmem:[#allocation7 + $0x20] sm:$0xff]  ;;  %v307_v20 = vld [vmem:[#allocation7 + $0x28] sm:$0xff]  ;;  %p819_p11 = scmp.ne.s32.totalorder %s1124_s20, %s818_s30  ;;  %p1188_p0 = scmp.ne.s32.totalorder %s1183_s6, 0 }
  0x6e   : > { %v622_v21 = vpack.c.bf16 %v223_v17, %v222_v16  ;;  %v224_v22 = vld [vmem:[#allocation5 + $0x40] sm:$0xff]  ;;  %v225_v23 = vld [vmem:[#allocation5 + $0x48] sm:$0xff]  ;;  %v643_v24 = vpack.c.bf16 %v307_v20, %v306_v19  ;;  %v308_v25 = vld [vmem:[#allocation7 + $0x30] sm:$0xff]  ;;  %s898_s16 = smov [#allocation8]  }
  0x6f   : > { %638 = vmatpush3.bf16.msra.mxu1 %v637_v15  ;;  %v309_v26 = vld [vmem:[#allocation7 + $0x38] sm:$0xff]  ;;  %v625_v27 = vpack.c.bf16 %v225_v23, %v224_v22  ;;  %v226_v28 = vld [vmem:[#allocation5 + $0x50] sm:$0xff]  ;;  %v310_v31 = vld [vmem:[#allocation7 + $0x40] sm:$0xff]  ;;  %p820_p1 = pnand %p819_p11, %p1188_p0  ;;  %s822_s23 = sshll.u32 %s898_s16, 4  ;;  %s823_s23 = int_to_ptr.vmem [resolvable:$false] %s822_s23 }
  0x70   : > { %617 = vmatpush3.bf16.msra.mxu0 %v616_v7  ;;  %639 = vmatprep.subr.bf16.mxu1 %v895_v0  ;;  %v227_v29 = vld [vmem:[#allocation5 + $0x58] sm:$0xff]  ;;  %v646_v30 = vpack.c.bf16 %v309_v26, %v308_v25  ;;  %v311_v32 = vld [vmem:[#allocation7 + $0x48] sm:$0xff]  ;;  %v228_v34 = vld [vmem:[#allocation5 + $0x60] sm:$0xff]  ;;  %s824_s5 = scalar_lea.vmem %s823_s23, 256  ;;  %p825_p7 = scmp.lt.s32.totalorder %s1124_s20, %s823_s23 }
  0x71   : > { %618 = vmatprep.subr.bf16.mxu0 %v895_v0  ;;  %v628_v33 = vpack.c.bf16 %v227_v29, %v226_v28  ;;  %v229_v35 = vld [vmem:[#allocation5 + $0x68] sm:$0xff]  ;;  %v649_v36 = vpack.c.bf16 %v311_v32, %v310_v31  ;;  %v312_v37 = vld [vmem:[#allocation7 + $0x50] sm:$0xff]  ;;  %v313_v38 = vld [vmem:[#allocation7 + $0x58] sm:$0xff]  ;;  %p821_p3 = pneg %p820_p1  ;;  %p826_p9 = scmp.lt.s32.totalorder %s824_s5, %s818_s30 }
  0x72   : > { %v631_v39 = vpack.c.bf16 %v229_v35, %v228_v34  ;;  %v230_v40 = vld [vmem:[#allocation5 + $0x70] sm:$0xff]  ;;  %v231_v41 = vld [vmem:[#allocation5 + $0x78] sm:$0xff]  ;;  %v652_v42 = vpack.c.bf16 %v313_v38, %v312_v37  ;;  %v314_v43 = vld [vmem:[#allocation7 + $0x60] sm:$0xff] }
  0x73   : > { %641 = vmatpush3.bf16.msra.mxu1 %v640_v18  ;;  %v315_v44 = vld [vmem:[#allocation7 + $0x68] sm:$0xff]  ;;  %v634_v45 = vpack.c.bf16 %v231_v41, %v230_v40  ;;  %v316_v47 = vld [vmem:[#allocation7 + $0x70] sm:$0xff]  ;;  %v317_v48 = vld [vmem:[#allocation7 + $0x78] sm:$0xff]  ;;  %p827_p12 = por %p826_p9, %p825_p7 }
  0x74   : > { %620 = vmatpush3.bf16.msra.mxu0 %v619_v14  ;;  %642 = vmatprep.subr.bf16.mxu1 %v895_v0  ;;  %v655_v46 = vpack.c.bf16 %v315_v44, %v314_v43  ;;  %v215_v49 = vld [vmem:[%s1094_s22] sm:$0xff]  ;;  %v658_v50 = vpack.c.bf16 %v317_v48, %v316_v47 }
  0x75   : > { %621 = vmatprep.subr.bf16.mxu0 %v895_v0  ;;  %p828_p2 = pnand %p827_p12, %p821_p3 }
  0x77   : > { %644 = vmatpush3.bf16.msra.mxu1 %v643_v24 }
  0x78   : > { %623 = vmatpush3.bf16.msra.mxu0 %v622_v21  ;;  %645 = vmatprep.subr.bf16.mxu1 %v895_v0 }
  0x79   : > { %624 = vmatprep.subr.bf16.mxu0 %v895_v0 }
  0x7b   : > { %647 = vmatpush3.bf16.msra.mxu1 %v646_v30 }
  0x7c   : > { %626 = vmatpush3.bf16.msra.mxu0 %v625_v27  ;;  %648 = vmatprep.subr.bf16.mxu1 %v895_v0 }
  0x7d   : > { %627 = vmatprep.subr.bf16.mxu0 %v895_v0 }
  0x7f   : > { %650 = vmatpush3.bf16.msra.mxu1 %v649_v36 }
  0x80   : > { %629 = vmatpush3.bf16.msra.mxu0 %v628_v33  ;;  %651 = vmatprep.subr.bf16.mxu1 %v895_v0 }
  0x81   : > { %630 = vmatprep.subr.bf16.mxu0 %v895_v0 }
  0x83   : > { %653 = vmatpush3.bf16.msra.mxu1 %v652_v42 }
  0x84   : > { %632 = vmatpush3.bf16.msra.mxu0 %v631_v39  ;;  %654 = vmatprep.subr.bf16.mxu1 %v895_v0 }
  0x85   : > { %633 = vmatprep.subr.bf16.mxu0 %v895_v0 }
  0x87   : > { %656 = vmatpush3.bf16.msra.mxu1 %v655_v46 }
  0x88   : > { %635 = vmatpush3.bf16.msra.mxu0 %v634_v45  ;;  %657 = vmatprep.subr.bf16.mxu1 %v895_v0 }
  0x8b   : > { %575 = vmatmul.mubr.f32.vlgmr.msra.gmra.mrb[0].mxu0 %v215_v49  ;;  %659 = vmatpush3.bf16.msra.mxu1 %v658_v50 }
 0x15e   : > { %v298_v51 = vpop.f32.mrb[0].mxu0 }
 0x15f   : > { %v576_v52 = vpop.f32.mrb[1].mxu0  ;;  %610 = vmatmul.mubr.f32.vlgmr.msra.gmra.mrb[0].mxu1 %v298_v51 }
 0x232   : > { %v384_v53 = vpop.f32.mrb[0].mxu1 }
 0x233   : > { %388 = vst [vmem:[%s214_s18] sm:$0xff] %v384_v53  ;;  %v611_v54 = vpop.f32.mrb[1].mxu1 }
 0x234   : > { %831 = shalt.err (!%p828_p2)
}
 0x235   : > { %s832_s10 = scalar_lea.hbm %s1129_s27, 128  ;;  %s836_s7 = scalar_lea.hbm %s1174_s3, 256 }
 0x236   : > { %p833_p13 = scmp.ne.s32.totalorder %s1129_s27, %s832_s10  ;;  %p837_p4 = scmp.lt.u32.totalorder %s1129_s27, %s1174_s3 }
 0x237   : > { %p838_p5 = scmp.lt.u32.totalorder %s836_s7, %s832_s10  ;;  %p840_p11 = scmp.lt.u32.totalorder %s832_s10, %s1129_s27 }
 0x238   : > { %p834_p6 = pnand %p833_p13, %p1188_p0 }
 0x239   : > { %p839_p8 = por %p838_p5, %p837_p4 }
 0x23a   : > { %p835_p10 = pneg %p834_p6 }
 0x23b   : > { %p841_p1 = por %p840_p11, %p839_p8 }
 0x23d   : > { %p842_p3 = pnand %p841_p1, %p835_p10 }
 0x23f   : > { %845 = shalt.err (!%p842_p3)
}
 0x240   : > { %670 = dma.vmem_to_hbm [thread:$0]  (%p1188_p0), %s1124_s20, 128, %s1129_s27, %s390_s29  }
 0x241 PF: > { %s415_s28 = sand.u32 1, %s876_s12   ;;  %p1189_p7 = scmp.ne.s32.totalorder %s1179_s19, 0 }
 0x242   : > { %p1190_p9 = scmp.ge.s32.totalorder %s888_s15, 2  ;;  %s416_s22 = scalar_lea.sflag [#allocation4], %s415_s28 }
 0x244   : > { %p684_p12 = pnand %p1190_p9, %p1189_p7 }
 0x246   : > { %871 = dma.done.wait (!%p684_p12), %s416_s22, 128  }
 0x247   : > { %873 = vsyncadd (!%p684_p12), %s416_s22, 4294967168  ;;  %p17_p2 = scmp.ge.s32.totalorder %s1029_s4, 4   ;;  %s1191_s12 = smov %s880_s13 }
 0x248   : > { %s1192_s13 = smov %s884_s14  ;;  %s1193_s14 = smov %s1045_s9 }
 0x249   : > { %s1194_s15 = smov %s1029_s4  ;;  %19 = sbr.rel (!%p17_p2) target bundleno = 6 (0x6), region = 85 }
 0x250   :  { %421 = vsyncpa [#allocation3], 1 }
 0x251   :  { %423 = vsyncpa [#allocation3 + $0x1], 1 }
 0x252   :  { %424 = vsyncpa [#allocation6], 1 }
 0x253   :  { %425 = vsyncpa [#allocation4], 1 }
 0x254   :  { %427 = vsyncpa [#allocation4 + $0x1], 1 }

</bundles_post_ra>
